<compile_context>
chip_gen: v5e
topology: v5e:2x2
jax: 0.10.0
libtpu: 0.0.40
codegen_flags: <defaults>
</compile_context>

<pallas_src>
import jax
import jax.numpy as jnp
from jax.experimental import pallas as pl
from jax.experimental.pallas import tpu as pltpu
import numpy as np


def _half_tsnan_kernel(topic_flat_ref, topic_mask_ref, text_flat_ref, text_mask_ref,
                       w_attn_topic_ref, w_attn_text_ref, expand_x_ref,
                       w_out_big_ref, b_out_row_ref, b_tgt_ref, out_ref):
    """One grid step = BB examples. Batch on sublanes, flat token*feature on lanes."""
    topic_flat = topic_flat_ref[...]     # (BB, Tt*E)
    topic_mask = topic_mask_ref[...]     # (BB, Tt)
    text_flat = text_flat_ref[...]       # (BB, Tx*E)
    text_mask = text_mask_ref[...]       # (BB, Tx)
    b_tgt = b_tgt_ref[0]                 # scalar (SMEM)

    # --- topic branch: masked mean folded into one scalar per example -------
    # per-token <topic_emb[b,t,:], w_topic> via a single MXU matmul against a
    # block-diagonal weight slab built in the wrapper.
    per_tok_topic = jnp.dot(topic_flat, w_attn_topic_ref[...],
                            preferred_element_type=jnp.float32)          # (BB, Tt)
    topic_lens = jnp.sum(topic_mask, axis=-1, keepdims=True)             # (BB, 1)
    # Exact divide (perf review): approx recip here would leak into every logit.
    # An all-zero topic mask gives inf/NaN, exactly like the PyTorch module.
    attn_topic = jnp.sum(topic_mask * per_tok_topic, axis=-1,
                         keepdims=True) / topic_lens                     # (BB, 1)

    # --- target_linear(cat([text, topic_mean])) + masked softmax over Tx ----
    attn_text = jnp.dot(text_flat, w_attn_text_ref[...],
                        preferred_element_type=jnp.float32)              # (BB, Tx)
    logits = attn_text + attn_topic + b_tgt                              # (BB, Tx)
    logits = logits + jnp.where(text_mask != 0.0, 0.0, -jnp.inf)
    m = jnp.max(logits, axis=-1, keepdims=True)                          # (BB, 1)
    p = jnp.exp(logits - m)                                              # (BB, Tx)
    s = jnp.sum(p, axis=-1, keepdims=True)                               # (BB, 1)
    attn = p * pl.reciprocal(s, approx=True)                             # (BB, Tx)

    # --- attention-weighted text + output projection (MXU, lane-dense out) --
    # Replicate attn[b, t] across its E lanes with an MXU matmul, full-lane
    # VPU multiply, then a block-diagonal output matmul producing a padded
    # 128-lane row per example (unmasked stores).
    attn_exp = jnp.dot(attn, expand_x_ref[...],
                       preferred_element_type=jnp.float32)               # (BB, Tx*E)
    comb = text_flat * attn_exp                                          # (BB, Tx*E)
    out = jnp.dot(comb, w_out_big_ref[...],
                  preferred_element_type=jnp.float32)                    # (BB, OUT_L)
    out_ref[...] = out + b_out_row_ref[...]                              # lane-dense


def half_tsnan(topic_emb, topic_mask, text_emb, text_mask,
               w_tgt, b_tgt, w_out, b_out, *, block_b=512):
    """Batched, lane-dense Pallas implementation of HalfTSNAN.forward."""
    B, Tt, E = topic_emb.shape
    _, Tx, _ = text_emb.shape
    O = w_out.shape[0]
    f32 = jnp.float32

    topic_emb = topic_emb.astype(f32)
    text_emb = text_emb.astype(f32)
    topic_mask = topic_mask.astype(f32)
    text_mask = text_mask.astype(f32)

    # --- batch blocking: BB examples per grid step ---------------------------
    BB = min(B, block_b)
    nb = -(-B // BB)
    B_pad = nb * BB
    if B_pad != B:
        pad = B_pad - B
        topic_emb = jnp.pad(topic_emb, ((0, pad), (0, 0), (0, 0)))
        text_emb = jnp.pad(text_emb, ((0, pad), (0, 0), (0, 0)))
        # Pad masks with ones so padded rows stay finite; they are sliced off.
        topic_mask = jnp.pad(topic_mask, ((0, pad), (0, 0)), constant_values=1.0)
        text_mask = jnp.pad(text_mask, ((0, pad), (0, 0)), constant_values=1.0)

    # --- lane-flat inputs: (B, T, E) -> (B, T*E); free row-major reshape -----
    topic_flat = topic_emb.reshape(B_pad, Tt * E)
    text_flat = text_emb.reshape(B_pad, Tx * E)

    # --- parameter slabs (tiny; built once, fetched once by the pipeline) ----
    w_text = w_tgt[0, :E].astype(f32)          # target_linear weight, text half
    w_topic = w_tgt[0, E:2 * E].astype(f32)    # target_linear weight, topic half

    eye_x = jnp.eye(Tx, dtype=f32)
    eye_t = jnp.eye(Tt, dtype=f32)
    # W_attn[t*E+e, t'] = w[e] * (t == t')  -> per-token <emb, w> via one matmul.
    w_attn_text = (eye_x[:, None, :] * w_text[None, :, None]).reshape(Tx * E, Tx)
    w_attn_topic = (eye_t[:, None, :] * w_topic[None, :, None]).reshape(Tt * E, Tt)
    # Expand_x[t, t'*E+e] = (t == t')  -> replicates attn[b, t] across E lanes.
    expand_x = jnp.broadcast_to(eye_x[:, :, None], (Tx, Tx, E)).reshape(Tx, Tx * E)

    out_cols = Tx * O
    out_lanes = max(128, -(-out_cols // 128) * 128)     # lane-dense output width
    # Block-diagonal output weight: W_out_big[t*E+e, t*O+o] = w_out[o, e].
    blocks = eye_x[:, None, :, None] * w_out.astype(f32).T[None, :, None, :]
    w_out_big = jnp.zeros((Tx * E, out_lanes), f32).at[:, :out_cols].set(
        blocks.reshape(Tx * E, out_cols))
    b_out_row = jnp.zeros((1, out_lanes), f32).at[0, :out_cols].set(
        jnp.tile(b_out.astype(f32), Tx))
    b_tgt_smem = b_tgt.reshape(1).astype(f32)

    out_flat = pl.pallas_call(
        _half_tsnan_kernel,
        out_shape=jax.ShapeDtypeStruct((B_pad, out_lanes), f32),
        grid=(nb,),
        in_specs=[
            pl.BlockSpec((BB, Tt * E), lambda b: (b, 0)),          # topic_flat
            pl.BlockSpec((BB, Tt), lambda b: (b, 0)),              # topic_mask
            pl.BlockSpec((BB, Tx * E), lambda b: (b, 0)),          # text_flat
            pl.BlockSpec((BB, Tx), lambda b: (b, 0)),              # text_mask
            pl.BlockSpec((Tt * E, Tt), lambda b: (0, 0)),          # w_attn_topic
            pl.BlockSpec((Tx * E, Tx), lambda b: (0, 0)),          # w_attn_text
            pl.BlockSpec((Tx, Tx * E), lambda b: (0, 0)),          # expand_x
            pl.BlockSpec((Tx * E, out_lanes), lambda b: (0, 0)),   # w_out_big
            pl.BlockSpec((1, out_lanes), lambda b: (0, 0)),        # b_out_row
            pl.BlockSpec(memory_space=pltpu.MemorySpace.SMEM),     # b_tgt scalar
        ],
        out_specs=pl.BlockSpec((BB, out_lanes), lambda b: (b, 0)),
        compiler_params=pltpu.CompilerParams(
            dimension_semantics=("parallel",)),
    )(topic_flat, topic_mask, text_flat, text_mask,
      w_attn_topic, w_attn_text, expand_x, w_out_big, b_out_row, b_tgt_smem)

    return out_flat[:B, :out_cols].reshape(B, Tx, O)


def half_tsnan_reference(topic_emb, topic_mask, text_emb, text_mask,
                         w_tgt, b_tgt, w_out, b_out):
    """Pure-JAX mirror of the PyTorch forward for verification."""
    topic_lens = jnp.sum(topic_mask, axis=1, keepdims=True)                   # (B,1)
    te = topic_emb * topic_mask[:, :, None]
    te = jnp.sum(te, axis=1, keepdims=True)                                   # (B,1,E)
    te = te / topic_lens[:, :, None]
    te = jnp.broadcast_to(te, text_emb.shape)                                 # (B,Tx,E)
    cat_emb = jnp.concatenate([text_emb, te], axis=2)                         # (B,Tx,2E)
    attn = cat_emb @ w_tgt.T + b_tgt                                          # (B,Tx,1)
    mask = jnp.where(text_mask != 0.0, 0.0, -jnp.inf)                         # (B,Tx)
    attn = attn + mask[:, :, None]
    attn = jax.nn.softmax(attn, axis=1)
    comb = text_emb * attn
    return comb @ w_out.T + b_out                                             # (B,Tx,O)


if __name__ == "__main__":
    # Small shapes consistent with the module: embed_size == hidden_size.
    B, Tt, Tx = 2, 8, 8
    E = 32          # embed_size == hidden_size
    O = 3           # output_size

    key = jax.random.PRNGKey(0)
    k1, k2, k3, k4, k5, k6 = jax.random.split(key, 6)

    topic_emb = jax.random.normal(k1, (B, Tt, E), dtype=jnp.float32)
    text_emb = jax.random.normal(k2, (B, Tx, E), dtype=jnp.float32)

    # 0/1 float prefix masks with at least one valid position per row.
    topic_lens = jnp.array([5, 8], dtype=jnp.int32)
    text_lens = jnp.array([6, 8], dtype=jnp.int32)
    topic_mask = (jnp.arange(Tt)[None, :] < topic_lens[:, None]).astype(jnp.float32)
    text_mask = (jnp.arange(Tx)[None, :] < text_lens[:, None]).astype(jnp.float32)

    # Deterministic parameter init (shapes from the module's __init__).
    w_tgt = jax.random.normal(k3, (1, 2 * E), dtype=jnp.float32) * 0.1   # target_linear.weight
    b_tgt = jax.random.normal(k4, (1,), dtype=jnp.float32) * 0.1         # target_linear.bias
    w_out = jax.random.normal(k5, (O, E), dtype=jnp.float32) * 0.1       # output_linear.weight
    b_out = jax.random.normal(k6, (O,), dtype=jnp.float32) * 0.1         # output_linear.bias

    out = half_tsnan(topic_emb, topic_mask, text_emb, text_mask,
                     w_tgt, b_tgt, w_out, b_out)
    out = jax.block_until_ready(out)

    ref = half_tsnan_reference(topic_emb, topic_mask, text_emb, text_mask,
                               w_tgt, b_tgt, w_out, b_out)
    ref = jax.block_until_ready(ref)

    assert out.shape == (B, Tx, O)
    # Softmax denominator uses the EUP approximate reciprocal and the matmuls
    # run on the MXU, so allow a small deviation from the exact-divide reference.
    np.testing.assert_allclose(np.asarray(out), np.asarray(ref), rtol=5e-3, atol=5e-3)
    print("KERNEL_OK")
</pallas_src>

<mosaic_0001>
module attributes {stable_mosaic.version = 11 : i64} {
  func.func @_half_tsnan_kernel(%arg0: i32, %arg1: memref<2x256xf32, #tpu.memory_space<vmem>>, %arg2: memref<2x8xf32, #tpu.memory_space<vmem>>, %arg3: memref<2x256xf32, #tpu.memory_space<vmem>>, %arg4: memref<2x8xf32, #tpu.memory_space<vmem>>, %arg5: memref<256x8xf32, #tpu.memory_space<vmem>>, %arg6: memref<256x8xf32, #tpu.memory_space<vmem>>, %arg7: memref<8x256xf32, #tpu.memory_space<vmem>>, %arg8: memref<256x128xf32, #tpu.memory_space<vmem>>, %arg9: memref<1x128xf32, #tpu.memory_space<vmem>>, %arg10: memref<1xf32, #tpu.memory_space<smem>>, %arg11: memref<2x128xf32, #tpu.memory_space<vmem>>) attributes {dimension_semantics = [#tpu.dimension_semantics<parallel>], iteration_bounds = array<i64: 1>, scalar_prefetch = 0 : i64, scratch_operands = 0 : i64, tpu.core_type = #tpu.core_type<tc>, window_params = [{transform_indices = @transform_0, window_bounds = array<i64: 2, 256>}, {transform_indices = @transform_1, window_bounds = array<i64: 2, 8>}, {transform_indices = @transform_2, window_bounds = array<i64: 2, 256>}, {transform_indices = @transform_3, window_bounds = array<i64: 2, 8>}, {pipeline_mode = #tpu.pipeline_mode<synchronous>, transform_indices = @transform_4, window_bounds = array<i64: 256, 8>}, {pipeline_mode = #tpu.pipeline_mode<synchronous>, transform_indices = @transform_5, window_bounds = array<i64: 256, 8>}, {pipeline_mode = #tpu.pipeline_mode<synchronous>, transform_indices = @transform_6, window_bounds = array<i64: 8, 256>}, {pipeline_mode = #tpu.pipeline_mode<synchronous>, transform_indices = @transform_7, window_bounds = array<i64: 256, 128>}, {pipeline_mode = #tpu.pipeline_mode<synchronous>, transform_indices = @transform_8, window_bounds = array<i64: 1, 128>}, {transform_indices = @transform_9, window_bounds = array<i64: 1>}, {transform_indices = @transform_10, window_bounds = array<i64: 2, 128>}]} {
    %c0 = arith.constant 0 : index
    %c0_0 = arith.constant 0 : index
    %0 = vector.load %arg1[%c0, %c0_0] : memref<2x256xf32, #tpu.memory_space<vmem>>, vector<2x256xf32>
    %c0_1 = arith.constant 0 : index
    %c0_2 = arith.constant 0 : index
    %1 = vector.load %arg2[%c0_1, %c0_2] : memref<2x8xf32, #tpu.memory_space<vmem>>, vector<2x8xf32>
    %c0_3 = arith.constant 0 : index
    %c0_4 = arith.constant 0 : index
    %2 = vector.load %arg3[%c0_3, %c0_4] : memref<2x256xf32, #tpu.memory_space<vmem>>, vector<2x256xf32>
    %c0_5 = arith.constant 0 : index
    %c0_6 = arith.constant 0 : index
    %3 = vector.load %arg4[%c0_5, %c0_6] : memref<2x8xf32, #tpu.memory_space<vmem>>, vector<2x8xf32>
    %c0_7 = arith.constant 0 : index
    %4 = memref.load %arg10[%c0_7] : memref<1xf32, #tpu.memory_space<smem>>
    %c0_8 = arith.constant 0 : index
    %c0_9 = arith.constant 0 : index
    %5 = vector.load %arg5[%c0_8, %c0_9] : memref<256x8xf32, #tpu.memory_space<vmem>>, vector<256x8xf32>
    %cst = arith.constant dense<0.000000e+00> : vector<2x8xf32>
    %6 = tpu.matmul %0, %5, %cst {dimension_numbers = #tpu.dot_dimension_numbers<[1], [0], [0], [1], [0, 0, 1, 1], [], []>} : vector<2x256xf32>, vector<256x8xf32>, vector<2x8xf32> -> vector<2x8xf32>
    %cst_10 = arith.constant dense<0.000000e+00> : vector<2xf32>
    %7 = vector.multi_reduction <add>, %1, %cst_10 [1] : vector<2x8xf32> to vector<2xf32>
    %8 = vector.shape_cast %7 : vector<2xf32> to vector<2x1xf32>
    %9 = arith.mulf %1, %6 : vector<2x8xf32>
    %cst_11 = arith.constant dense<0.000000e+00> : vector<2xf32>
    %10 = vector.multi_reduction <add>, %9, %cst_11 [1] : vector<2x8xf32> to vector<2xf32>
    %11 = vector.shape_cast %10 : vector<2xf32> to vector<2x1xf32>
    %12 = arith.divf %11, %8 : vector<2x1xf32>
    %c0_12 = arith.constant 0 : index
    %c0_13 = arith.constant 0 : index
    %13 = vector.load %arg6[%c0_12, %c0_13] : memref<256x8xf32, #tpu.memory_space<vmem>>, vector<256x8xf32>
    %cst_14 = arith.constant dense<0.000000e+00> : vector<2x8xf32>
    %14 = tpu.matmul %2, %13, %cst_14 {dimension_numbers = #tpu.dot_dimension_numbers<[1], [0], [0], [1], [0, 0, 1, 1], [], []>} : vector<2x256xf32>, vector<256x8xf32>, vector<2x8xf32> -> vector<2x8xf32>
    %15 = vector.broadcast %12 : vector<2x1xf32> to vector<2x8xf32>
    %16 = arith.addf %14, %15 : vector<2x8xf32>
    %17 = vector.broadcast %4 : f32 to vector<2x8xf32>
    %18 = arith.addf %16, %17 : vector<2x8xf32>
    %cst_15 = arith.constant 0.000000e+00 : f32
    %19 = vector.broadcast %cst_15 : f32 to vector<2x8xf32>
    %20 = arith.cmpf one, %3, %19 : vector<2x8xf32>
    %cst_16 = arith.constant 0.000000e+00 : f32
    %cst_17 = arith.constant 0xFF800000 : f32
    %21 = vector.broadcast %cst_16 : f32 to vector<2x8xf32>
    %22 = vector.broadcast %cst_17 : f32 to vector<2x8xf32>
    %23 = arith.select %20, %21, %22 : vector<2x8xi1>, vector<2x8xf32>
    %24 = arith.addf %18, %23 : vector<2x8xf32>
    %cst_18 = arith.constant dense<0xFF800000> : vector<2xf32>
    %25 = vector.multi_reduction <maximumf>, %24, %cst_18 [1] : vector<2x8xf32> to vector<2xf32>
    %26 = vector.shape_cast %25 : vector<2xf32> to vector<2x1xf32>
    %27 = vector.broadcast %26 : vector<2x1xf32> to vector<2x8xf32>
    %28 = arith.subf %24, %27 : vector<2x8xf32>
    %29 = math.exp %28 : vector<2x8xf32>
    %cst_19 = arith.constant dense<0.000000e+00> : vector<2xf32>
    %30 = vector.multi_reduction <add>, %29, %cst_19 [1] : vector<2x8xf32> to vector<2xf32>
    %31 = vector.shape_cast %30 : vector<2xf32> to vector<2x1xf32>
    %32 = tpu.reciprocal %31 {approx = true} : vector<2x1xf32> -> vector<2x1xf32>
    %33 = vector.broadcast %32 : vector<2x1xf32> to vector<2x8xf32>
    %34 = arith.mulf %29, %33 : vector<2x8xf32>
    %c0_20 = arith.constant 0 : index
    %c0_21 = arith.constant 0 : index
    %35 = vector.load %arg7[%c0_20, %c0_21] : memref<8x256xf32, #tpu.memory_space<vmem>>, vector<8x256xf32>
    %cst_22 = arith.constant dense<0.000000e+00> : vector<2x256xf32>
    %36 = tpu.matmul %34, %35, %cst_22 {dimension_numbers = #tpu.dot_dimension_numbers<[1], [0], [0], [1], [0, 0, 1, 1], [], []>} : vector<2x8xf32>, vector<8x256xf32>, vector<2x256xf32> -> vector<2x256xf32>
    %37 = arith.mulf %2, %36 : vector<2x256xf32>
    %c0_23 = arith.constant 0 : index
    %c0_24 = arith.constant 0 : index
    %38 = vector.load %arg8[%c0_23, %c0_24] : memref<256x128xf32, #tpu.memory_space<vmem>>, vector<256x128xf32>
    %cst_25 = arith.constant dense<0.000000e+00> : vector<2x128xf32>
    %39 = tpu.matmul %37, %38, %cst_25 {dimension_numbers = #tpu.dot_dimension_numbers<[1], [0], [0], [1], [0, 0, 1, 1], [], []>} : vector<2x256xf32>, vector<256x128xf32>, vector<2x128xf32> -> vector<2x128xf32>
    %c0_26 = arith.constant 0 : index
    %c0_27 = arith.constant 0 : index
    %40 = vector.load %arg9[%c0_26, %c0_27] : memref<1x128xf32, #tpu.memory_space<vmem>>, vector<1x128xf32>
    %41 = vector.broadcast %40 : vector<1x128xf32> to vector<2x128xf32>
    %42 = arith.addf %39, %41 : vector<2x128xf32>
    %c0_28 = arith.constant 0 : index
    %c0_29 = arith.constant 0 : index
    %43 = vector.load %arg11[%c0_28, %c0_29] : memref<2x128xf32, #tpu.memory_space<vmem>>, vector<2x128xf32>
    tpu.vector_store %arg11[%c0_28, %c0_29], %42 {strides = array<i32>} : memref<2x128xf32, #tpu.memory_space<vmem>>, vector<2x128xf32>,
    return
  }
  func.func @transform_0(%arg0: i32) -> (i32, i32) {
    %c0_i32 = arith.constant 0 : i32
    %c0_i32_0 = arith.constant 0 : i32
    return %arg0, %c0_i32 : i32, i32
  }
  func.func @transform_1(%arg0: i32) -> (i32, i32) {
    %c0_i32 = arith.constant 0 : i32
    %c0_i32_0 = arith.constant 0 : i32
    return %arg0, %c0_i32 : i32, i32
  }
  func.func @transform_2(%arg0: i32) -> (i32, i32) {
    %c0_i32 = arith.constant 0 : i32
    %c0_i32_0 = arith.constant 0 : i32
    return %arg0, %c0_i32 : i32, i32
  }
  func.func @transform_3(%arg0: i32) -> (i32, i32) {
    %c0_i32 = arith.constant 0 : i32
    %c0_i32_0 = arith.constant 0 : i32
    return %arg0, %c0_i32 : i32, i32
  }
  func.func @transform_4(%arg0: i32) -> (i32, i32) {
    %c0_i32 = arith.constant 0 : i32
    %c0_i32_0 = arith.constant 0 : i32
    %c0_i32_1 = arith.constant 0 : i32
    return %c0_i32, %c0_i32_0 : i32, i32
  }
  func.func @transform_5(%arg0: i32) -> (i32, i32) {
    %c0_i32 = arith.constant 0 : i32
    %c0_i32_0 = arith.constant 0 : i32
    %c0_i32_1 = arith.constant 0 : i32
    return %c0_i32, %c0_i32_0 : i32, i32
  }
  func.func @transform_6(%arg0: i32) -> (i32, i32) {
    %c0_i32 = arith.constant 0 : i32
    %c0_i32_0 = arith.constant 0 : i32
    %c0_i32_1 = arith.constant 0 : i32
    return %c0_i32, %c0_i32_0 : i32, i32
  }
  func.func @transform_7(%arg0: i32) -> (i32, i32) {
    %c0_i32 = arith.constant 0 : i32
    %c0_i32_0 = arith.constant 0 : i32
    %c0_i32_1 = arith.constant 0 : i32
    return %c0_i32, %c0_i32_0 : i32, i32
  }
  func.func @transform_8(%arg0: i32) -> (i32, i32) {
    %c0_i32 = arith.constant 0 : i32
    %c0_i32_0 = arith.constant 0 : i32
    %c0_i32_1 = arith.constant 0 : i32
    return %c0_i32, %c0_i32_0 : i32, i32
  }
  func.func @transform_9(%arg0: i32) -> i32 {
    %c0_i32 = arith.constant 0 : i32
    %c0_i32_0 = arith.constant 0 : i32
    return %c0_i32 : i32
  }
  func.func @transform_10(%arg0: i32) -> (i32, i32) {
    %c0_i32 = arith.constant 0 : i32
    %c0_i32_0 = arith.constant 0 : i32
    return %arg0, %c0_i32 : i32, i32
  }
}

</mosaic_0001>

<bundles_post_ra>
// kernel: tpu_custom_call.1
= control target key start
LH: loop header
LB: loop body
LE: loop exit
PB: predicated region body
PF: predicated region fallthrough
CT: control target
= control target key end

     0   :  { %vm120_vm0 = vcmask 58368   ;;  %s810_s0 = inlined_call_operand.vmem [shape: f32[2,256], index: 0, kind: input, shape index: {}]   ;;  %s811_s1 = inlined_call_operand.vmem [shape: f32[2,8], index: 1, kind: input, shape index: {}]   ;;  %s812_s2 = inlined_call_operand.vmem [shape: f32[2,256], index: 2, kind: input, shape index: {}]   ;;  %s813_s3 = inlined_call_operand.vmem [shape: f32[2,8], index: 3, kind: input, shape index: {}]   ;;  %s814_s4 = inlined_call_operand.vmem [shape: f32[256,8], index: 4, kind: input, shape index: {}]   ;;  %s815_s5 = inlined_call_operand.vmem [shape: f32[256,8], index: 5, kind: input, shape index: {}]   ;;  %s816_s6 = inlined_call_operand.vmem [shape: f32[8,256], index: 6, kind: input, shape index: {}]   ;;  %s817_s7 = inlined_call_operand.vmem [shape: f32[256,128], index: 7, kind: input, shape index: {}]   ;;  %s818_s8 = inlined_call_operand.vmem [shape: f32[1,128], index: 8, kind: input, shape index: {}]   ;;  %s819_s9 = inlined_call_operand.<no memory space> [shape: f32[1], index: 9, kind: input, shape index: {}]   ;;  %s820_s10 = inlined_call_operand.hbm [shape: f32[2,128], index: 10, kind: output, shape index: {}]  }
   0x1   :  { %v57_v0 = vld [vmem:[%s814_s4 + $0x78] sm:$0xff]  ;;  %v56_v2 = vld [vmem:[%s814_s4 + $0x70] sm:$0xff]  ;;  %v55_v4 = vld [vmem:[%s814_s4 + $0x68] sm:$0xff] }
   0x2   :  { %v73_v1 = vld [vmem:[%s814_s4 + $0xf8] sm:$0xff]  ;;  %80 = vmatpush.msra.mxu0 %v57_v0  ;;  %v72_v3 = vld [vmem:[%s814_s4 + $0xf0] sm:$0xff]  ;;  %v71_v5 = vld [vmem:[%s814_s4 + $0xe8] sm:$0xff] }
   0x3   :  { %100 = vmatpush.msra.mxu1 %v73_v1  ;;  %v54_v6 = vld [vmem:[%s814_s4 + $0x60] sm:$0xff]  ;;  %v53_v8 = vld [vmem:[%s814_s4 + $0x58] sm:$0xff]  ;;  %v52_v10 = vld [vmem:[%s814_s4 + $0x50] sm:$0xff] }
   0x4   :  { %81 = vmatpush.msra.mxu0 %v56_v2  ;;  %v70_v7 = vld [vmem:[%s814_s4 + $0xe0] sm:$0xff]  ;;  %v69_v9 = vld [vmem:[%s814_s4 + $0xd8] sm:$0xff]  ;;  %v68_v11 = vld [vmem:[%s814_s4 + $0xd0] sm:$0xff] }
   0x5   :  { %101 = vmatpush.msra.mxu1 %v72_v3  ;;  %v51_v12 = vld [vmem:[%s814_s4 + $0x48] sm:$0xff]  ;;  %v37_v14 = vld [vmem:[%s810_s0] sm:$0xf]  ;;  %v158_v15 = vld [vmem:[%s815_s5 + $0x78] sm:$0xff] }
   0x6   :  { %82 = vmatpush.msra.mxu0 %v55_v4  ;;  %v67_v13 = vld [vmem:[%s814_s4 + $0xc8] sm:$0xff]  ;;  %75 = vst [vmem:[#allocation1] ss:$4 sm:$0xff] %v37_v14  ;;  %v157_v16 = vld [vmem:[%s815_s5 + $0x70] sm:$0xff]  ;;  %v50_v17 = vld [vmem:[%s814_s4 + $0x40] sm:$0xff]  ;;  %181 = vmatpush.msra.mxu2 %v158_v15 }
   0x7   :  { %102 = vmatpush.msra.mxu1 %v71_v5  ;;  %v66_v18 = vld [vmem:[%s814_s4 + $0xc0] sm:$0xff]  ;;  %v174_v19 = vld [vmem:[%s815_s5 + $0xf8] sm:$0xff]  ;;  %v156_v20 = vld [vmem:[%s815_s5 + $0x68] sm:$0xff] }
   0x8   :  { %83 = vmatpush.msra.mxu0 %v54_v6  ;;  %v173_v21 = vld [vmem:[%s815_s5 + $0xf0] sm:$0xff]  ;;  %v49_v22 = vld [vmem:[%s814_s4 + $0x38] sm:$0xff]  ;;  %182 = vmatpush.msra.mxu2 %v157_v16  ;;  %v155_v25 = vld [vmem:[%s815_s5 + $0x60] sm:$0xff] }
   0x9   :  { %103 = vmatpush.msra.mxu1 %v70_v7  ;;  %v65_v23 = vld [vmem:[%s814_s4 + $0xb8] sm:$0xff]  ;;  %201 = vmatpush.msra.mxu3 %v174_v19  ;;  %v48_v24 = vld [vmem:[%s814_s4 + $0x30] sm:$0xff]  ;;  %v172_v26 = vld [vmem:[%s815_s5 + $0xe8] sm:$0xff] }
   0xa   :  { %84 = vmatpush.msra.mxu0 %v53_v8  ;;  %v64_v27 = vld [vmem:[%s814_s4 + $0xb0] sm:$0xff]  ;;  %v47_v28 = vld [vmem:[%s814_s4 + $0x28] sm:$0xff]  ;;  %v573_v29 = vld [vmem:[%s812_s2] sm:$0xf]  ;;  %183 = vmatpush.msra.mxu2 %v156_v20 }
   0xb   :  { %104 = vmatpush.msra.mxu1 %v69_v9  ;;  %202 = vmatpush.msra.mxu3 %v173_v21  ;;  %v63_v30 = vld [vmem:[%s814_s4 + $0xa8] sm:$0xff]  ;;  %v154_v31 = vld [vmem:[%s815_s5 + $0x58] sm:$0xff]  ;;  %v171_v32 = vld [vmem:[%s815_s5 + $0xe0] sm:$0xff] }
   0xc   :  { %85 = vmatpush.msra.mxu0 %v52_v10  ;;  %184 = vmatpush.msra.mxu2 %v155_v25  ;;  %v153_v35 = vld [vmem:[%s815_s5 + $0x50] sm:$0xff]  ;;  %v170_v36 = vld [vmem:[%s815_s5 + $0xd8] sm:$0xff]  ;;  %v46_v37 = vld [vmem:[%s814_s4 + $0x20] sm:$0xff] }
   0xd   :  { %105 = vmatpush.msra.mxu1 %v68_v11  ;;  %v76_v33 = vld.sshfl [vmem:[#allocation1] sm:$0xff pattern:$0x73625140]  ;;  %v77_v34 = vld.sshfl [vmem:[#allocation1 + $0x8] sm:$0xff pattern:$0x73625140]  ;;  %203 = vmatpush.msra.mxu3 %v172_v26 }
   0xe   :  { %86 = vmatpush.msra.mxu0 %v51_v12  ;;  %176 = vst [vmem:[#allocation1] ss:$4 sm:$0xff] %v573_v29  ;;  %v62_v38 = vld [vmem:[%s814_s4 + $0xa0] sm:$0xff]  ;;  %185 = vmatpush.msra.mxu2 %v154_v31  ;;  %v45_v39 = vld [vmem:[%s814_s4 + $0x18] sm:$0xff]  ;;  %v152_v40 = vld [vmem:[%s815_s5 + $0x48] sm:$0xff] }
   0xf   :  { %106 = vmatpush.msra.mxu1 %v67_v13  ;;  %204 = vmatpush.msra.mxu3 %v171_v32  ;;  %v169_v41 = vld [vmem:[%s815_s5 + $0xd0] sm:$0xff]  ;;  %v61_v42 = vld [vmem:[%s814_s4 + $0x98] sm:$0xff]  ;;  %v151_v43 = vld [vmem:[%s815_s5 + $0x40] sm:$0xff] }
  0x10   :  { %87 = vmatpush.msra.mxu0 %v50_v17  ;;  %186 = vmatpush.msra.mxu2 %v153_v35  ;;  %v615_v44 = vld [vmem:[%s811_s1] sm:$0x3]  ;;  %v168_v45 = vld [vmem:[%s815_s5 + $0xc8] sm:$0xff] }
  0x11   :  { %107 = vmatpush.msra.mxu1 %v66_v18  ;;  %205 = vmatpush.msra.mxu3 %v170_v36 }
  0x12   :  { %88 = vmatpush.msra.mxu0 %v49_v22 }
  0x13   :  { %108 = vmatpush.msra.mxu1 %v65_v23 }
  0x14   :  { %89 = vmatpush.msra.mxu0 %v48_v24 }
  0x15   :  { %109 = vmatpush.msra.mxu1 %v64_v27 }
  0x16   :  { %90 = vmatpush.msra.mxu0 %v47_v28 }
  0x17   :  { %110 = vmatpush.msra.mxu1 %v63_v30 }
  0x18   :  { %91 = vmatpush.msra.mxu0 %v46_v37 }
  0x19   :  { %111 = vmatpush.msra.mxu1 %v62_v38 }
  0x1a   :  { %16 = vsyncpa [#allocation4], 0  ;;  %v44_v46 = vld [vmem:[%s814_s4 + $0x10] sm:$0xff]  ;;  %187 = vmatpush.msra.mxu2 %v152_v40  ;;  %206 = vmatpush.msra.mxu3 %v169_v41  ;;  %v121_v48 = vsel %vm120_vm0, %v615_v44, 0.0  ;;  %v150_v49 = vld [vmem:[%s815_s5 + $0x38] sm:$0xff]  ;;  %v221_v31 = vstv %s819_s9  ;;  %vm239_vm6 = vcmask 64512  }
  0x1b   :  { %v60_v47 = vld [vmem:[%s814_s4 + $0x90] sm:$0xff]  ;;  %92 = vmatpush.msra.mxu0 %v45_v39  ;;  %112 = vmatpush.msra.mxu1 %v61_v42  ;;  %v43_v50 = vld [vmem:[%s814_s4 + $0x8] sm:$0xff]  ;;  %v167_v52 = vld [vmem:[%s815_s5 + $0xc0] sm:$0xff]  ;;  %vm286_vm7 = vcmask 1041408   ;;  %s380_s30 = sshll.u32 %s820_s10, 4  ;;  %s381_s30 = int_to_ptr.hbm [resolvable:$true] %s380_s30 }
  0x1c   :  { %v59_v51 = vld [vmem:[%s814_s4 + $0x88] sm:$0xff]  ;;  %188 = vmatpush.msra.mxu2 %v151_v43  ;;  %207 = vmatpush.msra.mxu3 %v168_v45  ;;  %v149_v53 = vld [vmem:[%s815_s5 + $0x30] sm:$0xff]  ;;  %v42_v54 = vld [vmem:[%s814_s4] sm:$0xff] }
  0x1d   :  { %93 = vmatpush.msra.mxu0 %v44_v46  ;;  %113 = vmatpush.msra.mxu1 %v60_v47  ;;  %v58_v55 = vld [vmem:[%s814_s4 + $0x80] sm:$0xff]  ;;  %v166_v56 = vld [vmem:[%s815_s5 + $0xb8] sm:$0xff]  ;;  %v148_v57 = vld [vmem:[%s815_s5 + $0x28] sm:$0xff] }
  0x1e   :  { %122 = vadd.xlane.f32.xlu0 %v121_v48  ;;  %189 = vmatpush.msra.mxu2 %v150_v49  ;;  %v165_v58 = vld [vmem:[%s815_s5 + $0xb0] sm:$0xff]  ;;  %v147_v59 = vld [vmem:[%s815_s5 + $0x20] sm:$0xff]  ;;  %v164_v60 = vld [vmem:[%s815_s5 + $0xa8] sm:$0xff] }
  0x1f   :  { %94 = vmatpush.msra.mxu0 %v43_v50  ;;  %114 = vmatpush.msra.mxu1 %v59_v51  ;;  %v146_v61 = vld [vmem:[%s815_s5 + $0x18] sm:$0xff]  ;;  %v163_v62 = vld [vmem:[%s815_s5 + $0xa0] sm:$0xff]  ;;  %v145_v63 = vld [vmem:[%s815_s5 + $0x10] sm:$0xff] }
  0x20   :  { %208 = vmatpush.msra.mxu3 %v167_v52  ;;  %190 = vmatpush.msra.mxu2 %v149_v53  ;;  %v162_v0 = vld [vmem:[%s815_s5 + $0x98] sm:$0xff]  ;;  %v144_v1 = vld [vmem:[%s815_s5 + $0x8] sm:$0xff]  ;;  %v161_v2 = vld [vmem:[%s815_s5 + $0x90] sm:$0xff] }
  0x21   :  { %95 = vmatpush.msra.mxu0 %v42_v54  ;;  %115 = vmatpush.msra.mxu1 %v58_v55  ;;  %v143_v3 = vld [vmem:[%s815_s5] sm:$0xff]  ;;  %v160_v5 = vld [vmem:[%s815_s5 + $0x88] sm:$0xff]  ;;  %v305_v45 = vld [vmem:[%s817_s7 + $0x78] sm:$0xff] }
  0x22   :  { %96 = vmatmul.f32.vlgmr.msra.gmra.mxu0 %v76_v33  ;;  %116 = vmatmul.f32.vlgmr.msra.gmra.mxu1 %v77_v34  ;;  %v177_v4 = vld.sshfl [vmem:[#allocation1] sm:$0xff pattern:$0x73625140]  ;;  %v178_v7 = vld.sshfl [vmem:[#allocation1 + $0x8] sm:$0xff pattern:$0x73625140] }
  0x23   :  { %209 = vmatpush.msra.mxu3 %v166_v56  ;;  %191 = vmatpush.msra.mxu2 %v148_v57  ;;  %v159_v6 = vld [vmem:[%s815_s5 + $0x80] sm:$0xff]  ;;  %v426_v33 = vmov -inf   ;;  %v238_v43 = vld [vmem:[%s816_s6 + $0x8] sm:$0xff]  ;;  %v321_v46 = vld [vmem:[%s817_s7 + $0xf8] sm:$0xff] }
  0x24   :  { %v40_v26 = vld [vmem:[%s813_s3] sm:$0x3]  ;;  %278 = vmatpush.msrb.mxu1 %v238_v43  ;;  %v304_v47 = vld [vmem:[%s817_s7 + $0x70] sm:$0xff]  ;;  %v303_v49 = vld [vmem:[%s817_s7 + $0x68] sm:$0xff] }
  0x25   :  { %210 = vmatpush.msra.mxu3 %v165_v58  ;;  %192 = vmatpush.msra.mxu2 %v147_v59  ;;  %vm223_vm5 = vcmp.ne.f32.partialorder %v40_v26, 0.0  ;;  %v320_v48 = vld [vmem:[%s817_s7 + $0xf0] sm:$0xff]  ;;  %v319_v50 = vld [vmem:[%s817_s7 + $0xe8] sm:$0xff]  ;;  %v302_v51 = vld [vmem:[%s817_s7 + $0x60] sm:$0xff] }
  0x26   :  { %v224_v34 = vsel %vm223_vm5, 0.0, %v426_v33  ;;  %v318_v52 = vld [vmem:[%s817_s7 + $0xe0] sm:$0xff]  ;;  %v301_v53 = vld [vmem:[%s817_s7 + $0x58] sm:$0xff]  ;;  %v300_v55 = vld [vmem:[%s817_s7 + $0x50] sm:$0xff] }
  0x27   :  { %211 = vmatpush.msra.mxu3 %v164_v60  ;;  %193 = vmatpush.msra.mxu2 %v146_v61  ;;  %v317_v54 = vld [vmem:[%s817_s7 + $0xd8] sm:$0xff]  ;;  %v316_v56 = vld [vmem:[%s817_s7 + $0xd0] sm:$0xff]  ;;  %v299_v57 = vld [vmem:[%s817_s7 + $0x48] sm:$0xff] }
  0x28   :  { %v315_v58 = vld [vmem:[%s817_s7 + $0xc8] sm:$0xff]  ;;  %v298_v59 = vld [vmem:[%s817_s7 + $0x40] sm:$0xff]  ;;  %v297_v61 = vld [vmem:[%s817_s7 + $0x38] sm:$0xff] }
  0x29   :  { %212 = vmatpush.msra.mxu3 %v163_v62  ;;  %194 = vmatpush.msra.mxu2 %v145_v63  ;;  %v314_v60 = vld [vmem:[%s817_s7 + $0xc0] sm:$0xff]  ;;  %v313_v62 = vld [vmem:[%s817_s7 + $0xb8] sm:$0xff] }
  0x2b   :  { %213 = vmatpush.msra.mxu3 %v162_v0  ;;  %195 = vmatpush.msra.mxu2 %v144_v1 }
  0x2d   :  { %214 = vmatpush.msra.mxu3 %v161_v2  ;;  %196 = vmatpush.msra.mxu2 %v143_v3  ;;  %v296_v2 = vld [vmem:[%s817_s7 + $0x30] sm:$0xff] }
  0x2e   :  { %197 = vmatmul.f32.vlgmr.msra.gmra.mxu2 %v177_v4  ;;  %v312_v3 = vld [vmem:[%s817_s7 + $0xb0] sm:$0xff]  ;;  %v295_v4 = vld [vmem:[%s817_s7 + $0x28] sm:$0xff] }
  0x2f   :  { %215 = vmatpush.msra.mxu3 %v160_v5  ;;  %332 = vmatpush.msrb.mxu2 %v305_v45  ;;  %v311_v5 = vld [vmem:[%s817_s7 + $0xa8] sm:$0xff] }
  0x31   :  { %216 = vmatpush.msra.mxu3 %v159_v6  ;;  %333 = vmatpush.msrb.mxu2 %v304_v47  ;;  %v294_v6 = vld [vmem:[%s817_s7 + $0x20] sm:$0xff] }
  0x32   :  { %217 = vmatmul.f32.vlgmr.msra.gmra.mxu3 %v178_v7  ;;  %v310_v7 = vld [vmem:[%s817_s7 + $0xa0] sm:$0xff] }
  0x33   :  { %352 = vmatpush.msrb.mxu3 %v321_v46  ;;  %334 = vmatpush.msrb.mxu2 %v303_v49 }
  0x35   :  { %353 = vmatpush.msrb.mxu3 %v320_v48  ;;  %335 = vmatpush.msrb.mxu2 %v302_v51 }
  0x37   :  { %354 = vmatpush.msrb.mxu3 %v319_v50  ;;  %336 = vmatpush.msrb.mxu2 %v301_v53 }
  0x39   :  { %355 = vmatpush.msrb.mxu3 %v318_v52  ;;  %337 = vmatpush.msrb.mxu2 %v300_v55 }
  0x3b   :  { %356 = vmatpush.msrb.mxu3 %v317_v54  ;;  %338 = vmatpush.msrb.mxu2 %v299_v57 }
  0x3d   :  { %357 = vmatpush.msrb.mxu3 %v316_v56  ;;  %339 = vmatpush.msrb.mxu2 %v298_v59 }
  0x3f   :  { %358 = vmatpush.msrb.mxu3 %v315_v58  ;;  %340 = vmatpush.msrb.mxu2 %v297_v61 }
  0x41   :  { %359 = vmatpush.msrb.mxu3 %v314_v60  ;;  %341 = vmatpush.msrb.mxu2 %v296_v2 }
  0x43   :  { %360 = vmatpush.msrb.mxu3 %v313_v62  ;;  %342 = vmatpush.msrb.mxu2 %v295_v4 }
  0x45   :  { %361 = vmatpush.msrb.mxu3 %v312_v3  ;;  %343 = vmatpush.msrb.mxu2 %v294_v6 }
  0x47   :  { %362 = vmatpush.msrb.mxu3 %v311_v5 }
  0x49   :  { %363 = vmatpush.msrb.mxu3 %v310_v7 }
  0x91   :  { %v123_v13 = vpop.xlane.xlu0 %122 }
  0x92   :  { %394 = vrcp.f32 %v123_v13  ;;  %vm133_vm1 = vweird.f32 %v123_v13  ;;  %v139_v18 = vand.u32 2147483648, %v123_v13  ;;  %v137_v20 = vand.u32 2147483647, %v123_v13 }
  0x94   :  { %v140_v21 = vor.u32 1.1754944e-38, %v139_v18  ;;  %vm138_vm4 = vcmp.eq.f32.partialorder %v137_v20, 8.507059e+37 }
  0x98   :  { %v395_v14 = vpop.eup %394 }
  0x99   :  { %v129_v15 = vmul.f32 %v395_v14, %v123_v13  ;;  %vm134_vm2 = vweird.f32 %v395_v14  ;;  %v307_v13 = vld [vmem:[%s817_s7 + $0x88] sm:$0xff] }
  0x9a   :  { %vm135_vm3 = vmor %vm133_vm1, %vm134_vm2 }
  0x9b   :  { %v130_v16 = vsub.f32 1.0, %v129_v15  ;;  %v306_v15 = vld [vmem:[%s817_s7 + $0x80] sm:$0xff] }
  0x9d   :  { %v131_v17 = vmul.f32 %v395_v14, %v130_v16 }
  0x9f   :  { %v97_v8 = vpop.f32.mrf.mxu0  ;;  %v117_v9 = vpop.f32.mrf.mxu1  ;;  %v132_v19 = vadd.f32 %v395_v14, %v131_v17 }
  0xa0   :  { %v118_v10 = vadd.f32 %v117_v9, %v97_v8  ;;  %v293_v8 = vld [vmem:[%s817_s7 + $0x18] sm:$0xff] }
  0xa1   :  { %v136_v22 = vsel %vm135_vm3, %v395_v14, %v132_v19  ;;  %v309_v9 = vld [vmem:[%s817_s7 + $0x98] sm:$0xff]  ;;  %344 = vmatpush.msrb.mxu2 %v293_v8  ;;  %v290_v14 = vld [vmem:[%s817_s7] sm:$0xff] }
  0xa2   :  { %v124_v11 = vmul.f32 %v118_v10, %v615_v44  ;;  %v141_v23 = vsel %vm138_vm4, %v140_v21, %v136_v22  ;;  %v237_v44 = vld [vmem:[%s816_s6] sm:$0xff]  ;;  %v292_v10 = vld [vmem:[%s817_s7 + $0x10] sm:$0xff]  ;;  %364 = vmatpush.msrb.mxu3 %v309_v9 }
  0xa3   :  { %258 = vmatpush.msrb.mxu0 %v237_v44  ;;  %345 = vmatpush.msrb.mxu2 %v292_v10 }
  0xa4   :  { %v125_v12 = vsel %vm120_vm0, %v124_v11, 0.0  ;;  %v308_v11 = vld [vmem:[%s817_s7 + $0x90] sm:$0xff] }
  0xa5   :  { %126 = vadd.xlane.f32.xlu0 %v125_v12  ;;  %v291_v12 = vld [vmem:[%s817_s7 + $0x8] sm:$0xff]  ;;  %365 = vmatpush.msrb.mxu3 %v308_v11  ;;  %s427_s7 = smov [#allocation3]  }
  0xa6   :  { %346 = vmatpush.msrb.mxu2 %v291_v12  ;;  %s378_s27 = sshll.u32 %s427_s7, 4  ;;  %s379_s27 = int_to_ptr.vmem [resolvable:$true] %s378_s27 }
  0xa7   :  { %366 = vmatpush.msrb.mxu3 %v307_v13 }
  0xa8   :  { %347 = vmatpush.msrb.mxu2 %v290_v14 }
  0xa9   :  { %367 = vmatpush.msrb.mxu3 %v306_v15 }
  0xb1   :  { %v198_v25 = vpop.f32.mrf.mxu2 }
  0xb5   :  { %v218_v28 = vpop.f32.mrf.mxu3 }
 0x118   :  { %v127_v24 = vpop.xlane.xlu0 %126 }
 0x119   :  { %v142_v27 = vmul.f32 %v141_v23, %v127_v24  ;;  %v393_v23 = vld [vmem:[%s818_s8] ss:$0 sm:$0xff] }
 0x11b   :  { %v199_v30 = vadd.f32 %v198_v25, %v142_v27 }
 0x11d   :  { %v219_v32 = vadd.f32 %v218_v28, %v199_v30 }
 0x11f   :  { %v222_v35 = vadd.f32 %v221_v31, %v219_v32 }
 0x121   :  { %v225_v36 = vadd.f32 %v224_v34, %v222_v35 }
 0x123   :  { %v226_v37 = vsel %vm120_vm0, %v225_v36, -inf }
 0x124   :  { %227 = vmax.xlane.f32.xlu1 %v226_v37 }
 0x197   :  { %v228_v38 = vpop.xlane.xlu1 %227 }
 0x198   :  { %v229_v39 = vsub.f32 %v225_v36, %v228_v38 }
 0x19a   :  { %v230_v40 = vmul.f32 1.442695, %v229_v39 }
 0x19c   :  { %396 = vpow2.f32 %v230_v40 }
 0x1a2   :  { %v397_v41 = vpop.eup %396 }
 0x1a3   :  { %v232_v42 = vsel %vm120_vm0, %v397_v41, 0.0 }
 0x1a4   :  { %233 = vadd.xlane.f32.xlu1 %v232_v42 }
 0x217   :  { %v234_v63 = vpop.xlane.xlu1 %233 }
 0x218   :  { %398 = vrcp.f32 %v234_v63 }
 0x21e   :  { %v399_v0 = vpop.eup %398 }
 0x21f   :  { %v236_v1 = vmul.f32 %v399_v0, %v397_v41 }
 0x221   :  { %389 = vmatmul.msk.f32.vlgmr.msrb.gmra.mxu0 %vm239_vm6, %v236_v1  ;;  %390 = vmatmul.msk.f32.vlgmr.msrb.gmra.mxu1 %vm239_vm6, %v236_v1 }
 0x29e   :  { %v280_v16 = vpop.f32.mrf.mxu1  ;;  %v260_v18 = vpop.f32.mrf.mxu0 }
 0x29f   :  { %v285_v17 = vrot.slane %v280_v16, 6 }
 0x2a1   :  { %v287_v19 = vsel %vm286_vm7, %v260_v18, %v285_v17 }
 0x2a2   :  { %v289_v20 = vmul.f32 %v287_v19, %v573_v29 }
 0x2a4   :  { %327 = vst [vmem:[#allocation1] ss:$4 sm:$0xff] %v289_v20 }
 0x2ab   :  { %v328_v21 = vld.sshfl [vmem:[#allocation1] sm:$0xff pattern:$0x73625140]  ;;  %v329_v22 = vld.sshfl [vmem:[#allocation1 + $0x8] sm:$0xff pattern:$0x73625140] }
 0x2ac   :  { %348 = vmatmul.f32.vlgmr.msrb.gmra.mxu2 %v328_v21  ;;  %368 = vmatmul.f32.vlgmr.msrb.gmra.mxu3 %v329_v22 }
 0x32f   :  { %v349_v24 = vpop.f32.mrf.mxu2  ;;  %v369_v26 = vpop.f32.mrf.mxu3 }
 0x330   :  { %v350_v25 = vadd.f32 %v393_v23, %v349_v24 }
 0x332   :  { %v370_v27 = vadd.f32 %v369_v26, %v350_v25 }
 0x334   :  { %372 = vst [vmem:[#allocation3] sm:$0x3] %v370_v27 }
 0x335   :  { %383 = dma.vmem_to_hbm [thread:$0]  %s379_s27, 32, %s381_s30, [#allocation4]  }
 0x336   :  { %424 = dma.done.wait [#allocation4], 32  }
 0x337   :  { %425 = vsyncadd [#allocation4], 4294967264 }
 0x338   :  { %388 = vsyncpa [#allocation4], 1 }

</bundles_post_ra>
